<compile_context>
chip_gen: v5e
topology: v5e:2x2
jax: 0.10.0
libtpu: 0.0.40
codegen_flags: <defaults>
</compile_context>

<pallas_src>
import functools

import jax
import jax.numpy as jnp
from jax.experimental import pallas as pl
from jax.experimental.pallas import tpu as pltpu

NEG_SLOPE = 0.01
LANE = 128


# ----------------------------------------------------------------------------
# helpers
# ----------------------------------------------------------------------------
def _round_up(x, m):
    return ((x + m - 1) // m) * m


def _tc_per_chip():
    """v7x has two TensorCores per chip; earlier generations have one."""
    try:
        kind = jax.devices()[0].device_kind.lower()
    except Exception:
        return 1
    return 2 if "v7" in kind else 1


def _leaky_relu(x, slope=NEG_SLOPE):
    return jnp.where(x >= 0, x, x * jnp.asarray(slope, x.dtype))


def _linear(h, w_ref, b_ref, cdt):
    # MXU matmul in the weight dtype with f32 accumulation; bias-add and the
    # following activation run in `cdt` (f32 for f32 weights, bf16 otherwise).
    acc = jnp.dot(h, w_ref[...], preferred_element_type=jnp.float32)
    return acc.astype(cdt) + b_ref[...].astype(cdt)


# ----------------------------------------------------------------------------
# kernels
# ----------------------------------------------------------------------------
def poker_qnet_kernel(x_ref,
                      w1_ref, b1_ref,
                      w2_ref, b2_ref,
                      w3_ref, b3_ref,
                      w4_ref, b4_ref,
                      o_ref):
    cdt = w1_ref.dtype                   # compute dtype == weight dtype
    h = x_ref[...].astype(cdt)           # single cast (no-op on the f32 path)
    h = _leaky_relu(_linear(h, w1_ref, b1_ref, cdt))
    h = _leaky_relu(_linear(h, w2_ref, b2_ref, cdt))
    h = _leaky_relu(_linear(h, w3_ref, b3_ref, cdt))
    # Final layer: output columns pre-padded to 128 -> unmasked full-lane vst.
    q = _linear(h, w4_ref, b4_ref, jnp.float32)
    o_ref[...] = q.astype(o_ref.dtype)


def poker_qnet_argmax_kernel(num_actions,
                             x_ref,
                             w1_ref, b1_ref,
                             w2_ref, b2_ref,
                             w3_ref, b3_ref,
                             w4_ref, b4_ref,
                             a_ref):
    """Fused forward + greedy action selection: never writes Q values to HBM."""
    cdt = w1_ref.dtype
    h = x_ref[...].astype(cdt)
    h = _leaky_relu(_linear(h, w1_ref, b1_ref, cdt))
    h = _leaky_relu(_linear(h, w2_ref, b2_ref, cdt))
    h = _leaky_relu(_linear(h, w3_ref, b3_ref, cdt))
    q = _linear(h, w4_ref, b4_ref, jnp.float32)          # (TB, A_pad) f32
    tb, a_pad = q.shape
    lane = jax.lax.broadcasted_iota(jnp.int32, (tb, a_pad), 1)
    q = jnp.where(lane < num_actions, q, -jnp.inf)       # mask padded lanes
    qmax = jnp.max(q, axis=-1, keepdims=True)
    idx = jnp.min(jnp.where(q == qmax, lane, a_pad), axis=-1, keepdims=True)
    a_ref[...] = idx.astype(a_ref.dtype)


# ----------------------------------------------------------------------------
# parameter preparation (one-time work, outside the RL inner loop)
# ----------------------------------------------------------------------------
def prepare_params(params, matmul_dtype=None):
    """Pad the final layer to a lane-dense (x128) output and optionally cast
    weight matrices to a narrower MXU dtype (biases stay f32; the (1,N) bias
    cast inside the kernel is negligible).  Run once, reuse every step."""
    A = params["w4"].shape[1]
    A_pad = max(LANE, pl.cdiv(A, LANE) * LANE)
    out = {"action_space_size": A}
    for i in range(1, 5):
        w = params[f"w{i}"]
        b = params[f"b{i}"]
        if i == 4 and A_pad != A:
            w = jnp.pad(w, ((0, 0), (0, A_pad - A)))
            b = jnp.pad(b, ((0, 0), (0, A_pad - A)))
        if matmul_dtype is not None:
            w = w.astype(matmul_dtype)
        out[f"w{i}"] = w
        out[f"b{i}"] = b
    return out


def _flat_params(prepared):
    return tuple(prepared[k] for k in
                 ("w1", "b1", "w2", "b2", "w3", "b3", "w4", "b4"))


def _batch_tiling(B, block_b):
    """Pick batch tile TB and padded batch B_pad.  On v7x, moderate batches
    are split into >=2 tiles so the 'parallel' grid axis feeds both TCs."""
    min_tiles = 2 if (_tc_per_chip() >= 2 and B > 16) else 1
    if B <= block_b and min_tiles == 1:
        return B, B                       # single block; full dims are legal
    TB = min(block_b, _round_up(pl.cdiv(B, min_tiles), 8))
    return TB, _round_up(B, TB)


def _in_specs(TB, S, prepared):
    w1, b1, w2, b2, w3, b3, w4, b4 = _flat_params(prepared)
    # Activation tile moves over the batch grid; weights/biases use constant
    # index_maps so they stay VMEM-resident across all grid steps.
    return [
        pl.BlockSpec((TB, S), lambda i: (i, 0)),
        pl.BlockSpec(w1.shape, lambda i: (0, 0)),
        pl.BlockSpec(b1.shape, lambda i: (0, 0)),
        pl.BlockSpec(w2.shape, lambda i: (0, 0)),
        pl.BlockSpec(b2.shape, lambda i: (0, 0)),
        pl.BlockSpec(w3.shape, lambda i: (0, 0)),
        pl.BlockSpec(b3.shape, lambda i: (0, 0)),
        pl.BlockSpec(w4.shape, lambda i: (0, 0)),
        pl.BlockSpec(b4.shape, lambda i: (0, 0)),
    ]


def _cost_estimate(prepared, B_pad, S, out_row_bytes):
    w1, b1, w2, b2, w3, b3, w4, b4 = _flat_params(prepared)
    A = prepared["action_space_size"]                       # true A, not A_pad
    H1, H2, H3 = w1.shape[1], w2.shape[1], w3.shape[1]
    flops = 2 * B_pad * (S * H1 + H1 * H2 + H2 * H3 + H3 * A)
    param_bytes = sum(int(p.size) * p.dtype.itemsize
                      for p in (w1, b1, w2, b2, w3, b3, w4, b4))
    bytes_accessed = param_bytes + B_pad * S * 4 + B_pad * out_row_bytes
    return pl.CostEstimate(flops=int(flops), transcendentals=0,
                           bytes_accessed=int(bytes_accessed))


# ----------------------------------------------------------------------------
# public entry points
# ----------------------------------------------------------------------------
def poker_qnet_forward(state, prepared, *, block_b=1024, out_dtype=jnp.float32):
    """state: [B, S] f32; `prepared` from prepare_params. Returns [B, A] Q."""
    B, S = state.shape
    A = prepared["action_space_size"]
    A_pad = prepared["w4"].shape[1]
    out_dtype = jnp.dtype(out_dtype)

    TB, B_pad = _batch_tiling(B, block_b)
    x = state if B_pad == B else jnp.pad(state, ((0, B_pad - B), (0, 0)))

    out_padded = pl.pallas_call(
        poker_qnet_kernel,
        out_shape=jax.ShapeDtypeStruct((B_pad, A_pad), out_dtype),
        grid=(B_pad // TB,),
        in_specs=_in_specs(TB, S, prepared),
        out_specs=pl.BlockSpec((TB, A_pad), lambda i: (i, 0)),
        compiler_params=pltpu.CompilerParams(
            dimension_semantics=("parallel",)),      # megacore split on v7x
        cost_estimate=_cost_estimate(prepared, B_pad, S,
                                     A_pad * out_dtype.itemsize),
    )(x, *_flat_params(prepared))

    return out_padded[:B, :A]


def poker_qnet_greedy_actions(state, prepared, *, block_b=1024):
    """Fused forward + per-row argmax: returns [B] int32 greedy action ids."""
    B, S = state.shape
    A = prepared["action_space_size"]
    TB, B_pad = _batch_tiling(B, block_b)
    x = state if B_pad == B else jnp.pad(state, ((0, B_pad - B), (0, 0)))

    actions = pl.pallas_call(
        functools.partial(poker_qnet_argmax_kernel, A),
        out_shape=jax.ShapeDtypeStruct((B_pad, 1), jnp.int32),
        grid=(B_pad // TB,),
        in_specs=_in_specs(TB, S, prepared),
        out_specs=pl.BlockSpec((TB, 1), lambda i: (i, 0)),
        compiler_params=pltpu.CompilerParams(
            dimension_semantics=("parallel",)),
        cost_estimate=_cost_estimate(prepared, B_pad, S, 4),
    )(x, *_flat_params(prepared))
    return actions[:B, 0]


# TODO(synk): epsilon-greedy / softmax-multinomial sampling is host-side RNG +
# control flow in the original module; only the greedy argmax is fused here.


# ----------------------------------------------------------------------------
# init + reference (for self-test)
# ----------------------------------------------------------------------------
def init_params(key, state_space_size, action_space_size,
                hidden_sizes=(64, 128, 64)):
    """Deterministic init mimicking nn.Linear default (U[-1/sqrt(fan_in), +])."""
    sizes = [state_space_size, *hidden_sizes, action_space_size]
    params = {}
    keys = jax.random.split(key, 2 * (len(sizes) - 1))
    for i in range(len(sizes) - 1):
        fan_in, fan_out = sizes[i], sizes[i + 1]
        bound = 1.0 / jnp.sqrt(jnp.float32(fan_in))
        params[f"w{i + 1}"] = jax.random.uniform(
            keys[2 * i], (fan_in, fan_out), minval=-bound, maxval=bound,
            dtype=jnp.float32)
        params[f"b{i + 1}"] = jax.random.uniform(
            keys[2 * i + 1], (1, fan_out), minval=-bound, maxval=bound,
            dtype=jnp.float32)
    return params


def reference_forward(state, params):
    h = state
    for i in range(1, 4):
        h = h @ params[f"w{i}"].astype(jnp.float32) + params[f"b{i}"]
        h = jnp.where(h >= 0, h, NEG_SLOPE * h)
    return h @ params["w4"].astype(jnp.float32) + params["b4"]


if __name__ == "__main__":
    key = jax.random.PRNGKey(0)
    k_param, k_small, k_big, k_large = jax.random.split(key, 4)

    state_space_size = 8     # poker state features
    action_space_size = 4    # fold / call / raise / all-in
    hidden_sizes = (64, 128, 64)

    raw = init_params(k_param, state_space_size, action_space_size, hidden_sizes)
    prepared_f32 = prepare_params(raw)                    # v5e-friendly, no casts
    prepared_bf16 = prepare_params(raw, jnp.bfloat16)     # v6e/v7x MXU-friendly

    # --- small check (matches the original module's tiny use case) -----------
    state_small = jax.random.normal(k_small, (2, state_space_size), jnp.float32)
    q_small = jax.block_until_ready(poker_qnet_forward(state_small, prepared_f32))
    ref_small = reference_forward(state_small, raw)
    assert q_small.shape == (2, action_space_size)
    assert jnp.allclose(q_small, ref_small, atol=1e-5, rtol=1e-5), "small mismatch"

    # --- batched check: grid over batch tiles + padding + resident weights ---
    big_batch = 300                          # non-multiple of tile -> padded
    state_big = jax.random.normal(k_big, (big_batch, state_space_size), jnp.float32)
    q_big = jax.block_until_ready(
        poker_qnet_forward(state_big, prepared_f32, block_b=128))
    ref_big = reference_forward(state_big, raw)
    assert q_big.shape == (big_batch, action_space_size)
    assert jnp.allclose(q_big, ref_big, atol=1e-4, rtol=1e-4), "batched mismatch"

    # --- default large tile path (block_b=1024, multiple grid steps) ---------
    large_batch = 1500
    state_large = jax.random.normal(k_large, (large_batch, state_space_size),
                                    jnp.float32)
    q_large = jax.block_until_ready(poker_qnet_forward(state_large, prepared_f32))
    ref_large = reference_forward(state_large, raw)
    assert q_large.shape == (large_batch, action_space_size)
    assert jnp.allclose(q_large, ref_large, atol=1e-4, rtol=1e-4), "large mismatch"

    # --- bf16 weights + bf16 activations carried + bf16 output store ---------
    q_bf16 = jax.block_until_ready(
        poker_qnet_forward(state_big, prepared_bf16, block_b=128,
                           out_dtype=jnp.bfloat16))
    assert jnp.allclose(q_bf16.astype(jnp.float32), ref_big,
                        atol=5e-2, rtol=5e-2), "bf16 mismatch"

    # --- fused greedy action selection (no padded Q writeback) ---------------
    actions = jax.block_until_ready(
        poker_qnet_greedy_actions(state_big, prepared_f32, block_b=128))
    assert actions.shape == (big_batch,)
    chosen_q = ref_big[jnp.arange(big_batch), actions]
    assert bool(jnp.all(chosen_q >= ref_big.max(axis=-1) - 1e-4)), "argmax mismatch"

    print("KERNEL_OK")
</pallas_src>

<mosaic_0001>
module attributes {stable_mosaic.version = 11 : i64} {
  func.func @poker_qnet_kernel(%arg0: i32, %arg1: memref<2x8xf32, #tpu.memory_space<vmem>>, %arg2: memref<8x64xf32, #tpu.memory_space<vmem>>, %arg3: memref<1x64xf32, #tpu.memory_space<vmem>>, %arg4: memref<64x128xf32, #tpu.memory_space<vmem>>, %arg5: memref<1x128xf32, #tpu.memory_space<vmem>>, %arg6: memref<128x64xf32, #tpu.memory_space<vmem>>, %arg7: memref<1x64xf32, #tpu.memory_space<vmem>>, %arg8: memref<64x128xf32, #tpu.memory_space<vmem>>, %arg9: memref<1x128xf32, #tpu.memory_space<vmem>>, %arg10: memref<2x128xf32, #tpu.memory_space<vmem>>) attributes {dimension_semantics = [#tpu.dimension_semantics<parallel>], iteration_bounds = array<i64: 1>, scalar_prefetch = 0 : i64, scratch_operands = 0 : i64, tpu.core_type = #tpu.core_type<tc>, window_params = [{transform_indices = @transform_0, window_bounds = array<i64: 2, 8>}, {pipeline_mode = #tpu.pipeline_mode<synchronous>, transform_indices = @transform_1, window_bounds = array<i64: 8, 64>}, {pipeline_mode = #tpu.pipeline_mode<synchronous>, transform_indices = @transform_2, window_bounds = array<i64: 1, 64>}, {pipeline_mode = #tpu.pipeline_mode<synchronous>, transform_indices = @transform_3, window_bounds = array<i64: 64, 128>}, {pipeline_mode = #tpu.pipeline_mode<synchronous>, transform_indices = @transform_4, window_bounds = array<i64: 1, 128>}, {pipeline_mode = #tpu.pipeline_mode<synchronous>, transform_indices = @transform_5, window_bounds = array<i64: 128, 64>}, {pipeline_mode = #tpu.pipeline_mode<synchronous>, transform_indices = @transform_6, window_bounds = array<i64: 1, 64>}, {pipeline_mode = #tpu.pipeline_mode<synchronous>, transform_indices = @transform_7, window_bounds = array<i64: 64, 128>}, {pipeline_mode = #tpu.pipeline_mode<synchronous>, transform_indices = @transform_8, window_bounds = array<i64: 1, 128>}, {transform_indices = @transform_9, window_bounds = array<i64: 2, 128>}]} {
    %c0 = arith.constant 0 : index
    %c0_0 = arith.constant 0 : index
    %0 = vector.load %arg1[%c0, %c0_0] : memref<2x8xf32, #tpu.memory_space<vmem>>, vector<2x8xf32>
    %c0_1 = arith.constant 0 : index
    %c0_2 = arith.constant 0 : index
    %1 = vector.load %arg2[%c0_1, %c0_2] : memref<8x64xf32, #tpu.memory_space<vmem>>, vector<8x64xf32>
    %cst = arith.constant dense<0.000000e+00> : vector<2x64xf32>
    %2 = tpu.matmul %0, %1, %cst {dimension_numbers = #tpu.dot_dimension_numbers<[1], [0], [0], [1], [0, 0, 1, 1], [], []>} : vector<2x8xf32>, vector<8x64xf32>, vector<2x64xf32> -> vector<2x64xf32>
    %c0_3 = arith.constant 0 : index
    %c0_4 = arith.constant 0 : index
    %3 = vector.load %arg3[%c0_3, %c0_4] : memref<1x64xf32, #tpu.memory_space<vmem>>, vector<1x64xf32>
    %4 = vector.broadcast %3 : vector<1x64xf32> to vector<2x64xf32>
    %5 = arith.addf %2, %4 : vector<2x64xf32>
    %cst_5 = arith.constant 0.000000e+00 : f32
    %6 = vector.broadcast %cst_5 : f32 to vector<2x64xf32>
    %7 = arith.cmpf oge, %5, %6 : vector<2x64xf32>
    %cst_6 = arith.constant 0.00999999977 : f32
    %8 = vector.broadcast %cst_6 : f32 to vector<2x64xf32>
    %9 = arith.mulf %5, %8 : vector<2x64xf32>
    %10 = arith.select %7, %5, %9 : vector<2x64xi1>, vector<2x64xf32>
    %c0_7 = arith.constant 0 : index
    %c0_8 = arith.constant 0 : index
    %11 = vector.load %arg4[%c0_7, %c0_8] : memref<64x128xf32, #tpu.memory_space<vmem>>, vector<64x128xf32>
    %cst_9 = arith.constant dense<0.000000e+00> : vector<2x128xf32>
    %12 = tpu.matmul %10, %11, %cst_9 {dimension_numbers = #tpu.dot_dimension_numbers<[1], [0], [0], [1], [0, 0, 1, 1], [], []>} : vector<2x64xf32>, vector<64x128xf32>, vector<2x128xf32> -> vector<2x128xf32>
    %c0_10 = arith.constant 0 : index
    %c0_11 = arith.constant 0 : index
    %13 = vector.load %arg5[%c0_10, %c0_11] : memref<1x128xf32, #tpu.memory_space<vmem>>, vector<1x128xf32>
    %14 = vector.broadcast %13 : vector<1x128xf32> to vector<2x128xf32>
    %15 = arith.addf %12, %14 : vector<2x128xf32>
    %cst_12 = arith.constant 0.000000e+00 : f32
    %16 = vector.broadcast %cst_12 : f32 to vector<2x128xf32>
    %17 = arith.cmpf oge, %15, %16 : vector<2x128xf32>
    %cst_13 = arith.constant 0.00999999977 : f32
    %18 = vector.broadcast %cst_13 : f32 to vector<2x128xf32>
    %19 = arith.mulf %15, %18 : vector<2x128xf32>
    %20 = arith.select %17, %15, %19 : vector<2x128xi1>, vector<2x128xf32>
    %c0_14 = arith.constant 0 : index
    %c0_15 = arith.constant 0 : index
    %21 = vector.load %arg6[%c0_14, %c0_15] : memref<128x64xf32, #tpu.memory_space<vmem>>, vector<128x64xf32>
    %cst_16 = arith.constant dense<0.000000e+00> : vector<2x64xf32>
    %22 = tpu.matmul %20, %21, %cst_16 {dimension_numbers = #tpu.dot_dimension_numbers<[1], [0], [0], [1], [0, 0, 1, 1], [], []>} : vector<2x128xf32>, vector<128x64xf32>, vector<2x64xf32> -> vector<2x64xf32>
    %c0_17 = arith.constant 0 : index
    %c0_18 = arith.constant 0 : index
    %23 = vector.load %arg7[%c0_17, %c0_18] : memref<1x64xf32, #tpu.memory_space<vmem>>, vector<1x64xf32>
    %24 = vector.broadcast %23 : vector<1x64xf32> to vector<2x64xf32>
    %25 = arith.addf %22, %24 : vector<2x64xf32>
    %cst_19 = arith.constant 0.000000e+00 : f32
    %26 = vector.broadcast %cst_19 : f32 to vector<2x64xf32>
    %27 = arith.cmpf oge, %25, %26 : vector<2x64xf32>
    %cst_20 = arith.constant 0.00999999977 : f32
    %28 = vector.broadcast %cst_20 : f32 to vector<2x64xf32>
    %29 = arith.mulf %25, %28 : vector<2x64xf32>
    %30 = arith.select %27, %25, %29 : vector<2x64xi1>, vector<2x64xf32>
    %c0_21 = arith.constant 0 : index
    %c0_22 = arith.constant 0 : index
    %31 = vector.load %arg8[%c0_21, %c0_22] : memref<64x128xf32, #tpu.memory_space<vmem>>, vector<64x128xf32>
    %cst_23 = arith.constant dense<0.000000e+00> : vector<2x128xf32>
    %32 = tpu.matmul %30, %31, %cst_23 {dimension_numbers = #tpu.dot_dimension_numbers<[1], [0], [0], [1], [0, 0, 1, 1], [], []>} : vector<2x64xf32>, vector<64x128xf32>, vector<2x128xf32> -> vector<2x128xf32>
    %c0_24 = arith.constant 0 : index
    %c0_25 = arith.constant 0 : index
    %33 = vector.load %arg9[%c0_24, %c0_25] : memref<1x128xf32, #tpu.memory_space<vmem>>, vector<1x128xf32>
    %34 = vector.broadcast %33 : vector<1x128xf32> to vector<2x128xf32>
    %35 = arith.addf %32, %34 : vector<2x128xf32>
    %c0_26 = arith.constant 0 : index
    %c0_27 = arith.constant 0 : index
    %36 = vector.load %arg10[%c0_26, %c0_27] : memref<2x128xf32, #tpu.memory_space<vmem>>, vector<2x128xf32>
    tpu.vector_store %arg10[%c0_26, %c0_27], %35 {strides = array<i32>} : memref<2x128xf32, #tpu.memory_space<vmem>>, vector<2x128xf32>,
    return
  }
  func.func @transform_0(%arg0: i32) -> (i32, i32) {
    %c0_i32 = arith.constant 0 : i32
    %c0_i32_0 = arith.constant 0 : i32
    return %arg0, %c0_i32 : i32, i32
  }
  func.func @transform_1(%arg0: i32) -> (i32, i32) {
    %c0_i32 = arith.constant 0 : i32
    %c0_i32_0 = arith.constant 0 : i32
    %c0_i32_1 = arith.constant 0 : i32
    return %c0_i32, %c0_i32_0 : i32, i32
  }
  func.func @transform_2(%arg0: i32) -> (i32, i32) {
    %c0_i32 = arith.constant 0 : i32
    %c0_i32_0 = arith.constant 0 : i32
    %c0_i32_1 = arith.constant 0 : i32
    return %c0_i32, %c0_i32_0 : i32, i32
  }
  func.func @transform_3(%arg0: i32) -> (i32, i32) {
    %c0_i32 = arith.constant 0 : i32
    %c0_i32_0 = arith.constant 0 : i32
    %c0_i32_1 = arith.constant 0 : i32
    return %c0_i32, %c0_i32_0 : i32, i32
  }
  func.func @transform_4(%arg0: i32) -> (i32, i32) {
    %c0_i32 = arith.constant 0 : i32
    %c0_i32_0 = arith.constant 0 : i32
    %c0_i32_1 = arith.constant 0 : i32
    return %c0_i32, %c0_i32_0 : i32, i32
  }
  func.func @transform_5(%arg0: i32) -> (i32, i32) {
    %c0_i32 = arith.constant 0 : i32
    %c0_i32_0 = arith.constant 0 : i32
    %c0_i32_1 = arith.constant 0 : i32
    return %c0_i32, %c0_i32_0 : i32, i32
  }
  func.func @transform_6(%arg0: i32) -> (i32, i32) {
    %c0_i32 = arith.constant 0 : i32
    %c0_i32_0 = arith.constant 0 : i32
    %c0_i32_1 = arith.constant 0 : i32
    return %c0_i32, %c0_i32_0 : i32, i32
  }
  func.func @transform_7(%arg0: i32) -> (i32, i32) {
    %c0_i32 = arith.constant 0 : i32
    %c0_i32_0 = arith.constant 0 : i32
    %c0_i32_1 = arith.constant 0 : i32
    return %c0_i32, %c0_i32_0 : i32, i32
  }
  func.func @transform_8(%arg0: i32) -> (i32, i32) {
    %c0_i32 = arith.constant 0 : i32
    %c0_i32_0 = arith.constant 0 : i32
    %c0_i32_1 = arith.constant 0 : i32
    return %c0_i32, %c0_i32_0 : i32, i32
  }
  func.func @transform_9(%arg0: i32) -> (i32, i32) {
    %c0_i32 = arith.constant 0 : i32
    %c0_i32_0 = arith.constant 0 : i32
    return %arg0, %c0_i32 : i32, i32
  }
}

</mosaic_0001>

<bundles_post_ra>
// kernel: tpu_custom_call.1
= control target key start
LH: loop header
LB: loop body
LE: loop exit
PB: predicated region body
PF: predicated region fallthrough
CT: control target
= control target key end

     0   :  { %vm39_vm0 = vcmask 64512   ;;  %s404_s0 = inlined_call_operand.vmem [shape: f32[2,8], index: 0, kind: input, shape index: {}]   ;;  %s405_s1 = inlined_call_operand.vmem [shape: f32[8,64], index: 1, kind: input, shape index: {}]   ;;  %s406_s2 = inlined_call_operand.vmem [shape: f32[1,64], index: 2, kind: input, shape index: {}]   ;;  %s407_s3 = inlined_call_operand.vmem [shape: f32[64,128], index: 3, kind: input, shape index: {}]   ;;  %s408_s4 = inlined_call_operand.vmem [shape: f32[1,128], index: 4, kind: input, shape index: {}]   ;;  %s409_s5 = inlined_call_operand.vmem [shape: f32[128,64], index: 5, kind: input, shape index: {}]   ;;  %s410_s6 = inlined_call_operand.vmem [shape: f32[1,64], index: 6, kind: input, shape index: {}]   ;;  %s411_s7 = inlined_call_operand.vmem [shape: f32[64,128], index: 7, kind: input, shape index: {}]   ;;  %s412_s8 = inlined_call_operand.vmem [shape: f32[1,128], index: 8, kind: input, shape index: {}]   ;;  %s413_s9 = inlined_call_operand.hbm [shape: f32[2,128], index: 9, kind: output, shape index: {}]  }
   0x1   :  { %v34_v0 = vld [vmem:[%s405_s1] sm:$0xff]  ;;  %v73_v2 = vld [vmem:[%s407_s3 + $0x38] sm:$0xff]  ;;  %v72_v3 = vld [vmem:[%s407_s3 + $0x30] sm:$0xff] }
   0x2   :  { %v33_v1 = vld [vmem:[%s404_s0] sm:$0x3]  ;;  %58 = vmatpush.msra.mxu0 %v34_v0  ;;  %90 = vmatpush.msra.mxu1 %v73_v2  ;;  %v71_v4 = vld [vmem:[%s407_s3 + $0x28] sm:$0xff] }
   0x3   :  { %200 = vmatmul.msk.f32.vlgmr.msra.gmra.mxu0 %vm39_vm0, %v33_v1  ;;  %v70_v5 = vld [vmem:[%s407_s3 + $0x20] sm:$0xff] }
   0x4   :  { %91 = vmatpush.msra.mxu1 %v72_v3 }
   0x5   :  { %14 = vsyncpa [#allocation3], 0  ;;  %v69_v6 = vld [vmem:[%s407_s3 + $0x18] sm:$0xff]  ;;  %v68_v7 = vld [vmem:[%s407_s3 + $0x10] sm:$0xff]  ;;  %vm78_vm2 = vcmask 523264   ;;  %s234_s11 = smov [#allocation2]  }
   0x6   :  { %92 = vmatpush.msra.mxu1 %v71_v4  ;;  %v67_v8 = vld [vmem:[%s407_s3 + $0x8] sm:$0xff]  ;;  %v66_v9 = vld [vmem:[%s407_s3] sm:$0xff]  ;;  %v120_v10 = vld [vmem:[%s409_s5 + $0x78] sm:$0xff]  ;;  %s189_s12 = sshll.u32 %s234_s11, 4  ;;  %s190_s12 = int_to_ptr.vmem [resolvable:$true] %s189_s12 }
   0x7   :  { %v119_v11 = vld [vmem:[%s409_s5 + $0x70] sm:$0xff]  ;;  %125 = vmatpush.msra.mxu2 %v120_v10  ;;  %v118_v12 = vld [vmem:[%s409_s5 + $0x68] sm:$0xff]  ;;  %v117_v13 = vld [vmem:[%s409_s5 + $0x60] sm:$0xff] }
   0x8   :  { %93 = vmatpush.msra.mxu1 %v70_v5  ;;  %v116_v14 = vld [vmem:[%s409_s5 + $0x58] sm:$0xff]  ;;  %v115_v15 = vld [vmem:[%s409_s5 + $0x50] sm:$0xff]  ;;  %v114_v16 = vld [vmem:[%s409_s5 + $0x48] sm:$0xff] }
   0x9   :  { %126 = vmatpush.msra.mxu2 %v119_v11  ;;  %v113_v17 = vld [vmem:[%s409_s5 + $0x40] sm:$0xff]  ;;  %v112_v18 = vld [vmem:[%s409_s5 + $0x38] sm:$0xff]  ;;  %v111_v19 = vld [vmem:[%s409_s5 + $0x30] sm:$0xff] }
   0xa   :  { %94 = vmatpush.msra.mxu1 %v69_v6  ;;  %v110_v20 = vld [vmem:[%s409_s5 + $0x28] sm:$0xff]  ;;  %v109_v21 = vld [vmem:[%s409_s5 + $0x20] sm:$0xff]  ;;  %v108_v22 = vld [vmem:[%s409_s5 + $0x18] sm:$0xff] }
   0xb   :  { %127 = vmatpush.msra.mxu2 %v118_v12  ;;  %v204_v23 = vld [vmem:[%s406_s2] ss:$0 sm:$0xff]  ;;  %v107_v28 = vld [vmem:[%s409_s5 + $0x10] sm:$0xff]  ;;  %v106_v29 = vld [vmem:[%s409_s5 + $0x8] sm:$0xff]  ;;  %s191_s2 = sshll.u32 %s413_s9, 4  ;;  %s192_s2 = int_to_ptr.hbm [resolvable:$true] %s191_s2 }
   0xc   :  { %95 = vmatpush.msra.mxu1 %v68_v7  ;;  %v105_v30 = vld [vmem:[%s409_s5] sm:$0xff]  ;;  %v155_v31 = vld [vmem:[%s411_s7 + $0x38] sm:$0xff]  ;;  %v154_v32 = vld [vmem:[%s411_s7 + $0x30] sm:$0xff] }
   0xd   :  { %128 = vmatpush.msra.mxu2 %v117_v13  ;;  %171 = vmatpush.msra.mxu3 %v155_v31  ;;  %v153_v33 = vld [vmem:[%s411_s7 + $0x28] sm:$0xff]  ;;  %v152_v34 = vld [vmem:[%s411_s7 + $0x20] sm:$0xff]  ;;  %v151_v35 = vld [vmem:[%s411_s7 + $0x18] sm:$0xff] }
   0xe   :  { %96 = vmatpush.msra.mxu1 %v67_v8  ;;  %v205_v36 = vld [vmem:[%s408_s4] ss:$0 sm:$0xff]  ;;  %v150_v41 = vld [vmem:[%s411_s7 + $0x10] sm:$0xff]  ;;  %v149_v42 = vld [vmem:[%s411_s7 + $0x8] sm:$0xff] }
   0xf   :  { %129 = vmatpush.msra.mxu2 %v116_v14  ;;  %172 = vmatpush.msra.mxu3 %v154_v32  ;;  %v148_v43 = vld [vmem:[%s411_s7] sm:$0xff] }
  0x10   :  { %97 = vmatpush.msra.mxu1 %v66_v9  ;;  %v206_v44 = vld [vmem:[%s410_s6] ss:$0 sm:$0xff] }
  0x11   :  { %130 = vmatpush.msra.mxu2 %v115_v15  ;;  %173 = vmatpush.msra.mxu3 %v153_v33  ;;  %v207_v49 = vld [vmem:[%s412_s8] ss:$0 sm:$0xff] }
  0x13   :  { %131 = vmatpush.msra.mxu2 %v114_v16  ;;  %174 = vmatpush.msra.mxu3 %v152_v34 }
  0x15   :  { %132 = vmatpush.msra.mxu2 %v113_v17  ;;  %175 = vmatpush.msra.mxu3 %v151_v35 }
  0x17   :  { %133 = vmatpush.msra.mxu2 %v112_v18  ;;  %176 = vmatpush.msra.mxu3 %v150_v41 }
  0x19   :  { %134 = vmatpush.msra.mxu2 %v111_v19  ;;  %177 = vmatpush.msra.mxu3 %v149_v42 }
  0x1b   :  { %135 = vmatpush.msra.mxu2 %v110_v20  ;;  %178 = vmatpush.msra.mxu3 %v148_v43 }
  0x1d   :  { %136 = vmatpush.msra.mxu2 %v109_v21 }
  0x1f   :  { %137 = vmatpush.msra.mxu2 %v108_v22 }
  0x21   :  { %138 = vmatpush.msra.mxu2 %v107_v28 }
  0x23   :  { %139 = vmatpush.msra.mxu2 %v106_v29 }
  0x25   :  { %140 = vmatpush.msra.mxu2 %v105_v30 }
  0x80   :  { %v60_v24 = vpop.f32.mrf.mxu0 }
  0x81   :  { %v61_v25 = vadd.f32 %v204_v23, %v60_v24 }
  0x83   :  { %v64_v26 = vmul.f32 0.01, %v61_v25  ;;  %vm63_vm1 = vcmp.ge.f32.partialorder %v61_v25, 0.0 }
  0x85   :  { %v65_v27 = vsel %vm63_vm1, %v61_v25, %v64_v26 }
  0x86   :  { %201 = vmatmul.msk.f32.vlgmr.msra.gmra.mxu1 %vm78_vm2, %v65_v27 }
 0x103   :  { %v99_v37 = vpop.f32.mrf.mxu1 }
 0x104   :  { %v100_v38 = vadd.f32 %v205_v36, %v99_v37 }
 0x106   :  { %vm102_vm3 = vcmp.ge.f32.partialorder %v100_v38, 0.0  ;;  %v103_v39 = vmul.f32 0.01, %v100_v38 }
 0x108   :  { %v104_v40 = vsel %vm102_vm3, %v100_v38, %v103_v39 }
 0x109   :  { %141 = vmatmul.f32.vlgmr.msra.gmra.mxu2 %v104_v40 }
 0x18c   :  { %v142_v45 = vpop.f32.mrf.mxu2 }
 0x18d   :  { %v143_v46 = vadd.f32 %v206_v44, %v142_v45 }
 0x18f   :  { %v146_v47 = vmul.f32 0.01, %v143_v46  ;;  %vm145_vm4 = vcmp.ge.f32.partialorder %v143_v46, 0.0 }
 0x191   :  { %v147_v48 = vsel %vm145_vm4, %v143_v46, %v146_v47 }
 0x192   :  { %202 = vmatmul.msk.f32.vlgmr.msra.gmra.mxu3 %vm78_vm2, %v147_v48 }
 0x215   :  { %v180_v50 = vpop.f32.mrf.mxu3 }
 0x216   :  { %v181_v51 = vadd.f32 %v207_v49, %v180_v50 }
 0x218   :  { %183 = vst [vmem:[#allocation2] sm:$0x3] %v181_v51 }
 0x219   :  { %194 = dma.vmem_to_hbm [thread:$0]  %s190_s12, 32, %s192_s2, [#allocation3]  }
 0x21a   :  { %232 = dma.done.wait [#allocation3], 32  }
 0x21b   :  { %233 = vsyncadd [#allocation3], 4294967264 }
 0x21c   :  { %199 = vsyncpa [#allocation3], 1 }

</bundles_post_ra>
